<compile_context>
chip_gen: v5e
topology: v5e:2x2
jax: 0.10.0
libtpu: 0.0.40
codegen_flags: <defaults>
</compile_context>

<pallas_src>
import functools

import jax
import jax.numpy as jnp
from jax import lax
from jax.experimental import pallas as pl
from jax.experimental.pallas import tpu as pltpu

LANES = 128
SUBLANES = 8


def _round_up(x, m):
    return ((x + m - 1) // m) * m


def bigram_kernel(*refs, vocab, vp, bt, tile_bt, has_targets, want_logits):
    """One grid step: gather `tile_bt` embedding rows (+ batched CE loss)."""
    it = iter(refs)
    idx_ref = next(it)                                  # SMEM (btp,) int32
    tgt_ref = next(it) if has_targets else None         # SMEM (btp,) int32
    table_ref = next(it)                                # VMEM (V, vp) f32
    logits_ref = next(it) if want_logits else None      # VMEM (tile_bt, vp)
    loss_ref = next(it) if has_targets else None        # SMEM (1, 1) f32
    gath_ref = next(it) if not want_logits else None    # VMEM scratch
    acc_ref = next(it) if has_targets else None         # VMEM (1, 1) scratch

    step = pl.program_id(0)
    nsteps = pl.num_programs(0)
    tile_base = step * tile_bt

    # Gathered rows land either directly in the logits output tile or in a
    # VMEM scratch tile (loss-only mode).
    dest_ref = logits_ref if want_logits else gath_ref

    if has_targets:
        @pl.when(step == 0)
        def _init():
            acc_ref[...] = jnp.zeros_like(acc_ref)

    # Hoisted constants (built once, reused inside the chunk loop).
    lane_ids = lax.broadcasted_iota(jnp.int32, (1, vp), 1)

    n_chunks = tile_bt // SUBLANES

    def chunk_body(c, picked_sum):
        base_r = pl.multiple_of(c * SUBLANES, SUBLANES)
        rows = []
        oh_rows = []
        for r in range(SUBLANES):                        # small static unroll
            g = tile_base + base_r + r
            i_r = idx_ref[g]                             # SMEM scalar read
            # Embedding lookup = dynamic row gather (load path, no MXU).
            rows.append(table_ref[pl.ds(i_r, 1), :])     # (1, vp)
            if has_targets:
                t_r = tgt_ref[g]
                row_valid = g < bt                       # pad rows contribute 0
                oh_rows.append(jnp.where(
                    jnp.logical_and(lane_ids == t_r, row_valid), 1.0, 0.0))
        chunk = jnp.concatenate(rows, axis=0)            # (8, vp) f32
        # Coalesced full-vreg store of 8 rows at once.
        dest_ref[pl.ds(base_r, SUBLANES), :] = chunk
        if has_targets:
            oh = jnp.concatenate(oh_rows, axis=0)        # (8, vp) one-hot
            picked = jnp.sum(oh * chunk, axis=1, keepdims=True)   # (8, 1)
            picked_sum = picked_sum + jnp.sum(picked, axis=0, keepdims=True)
        return picked_sum

    picked_sum = lax.fori_loop(
        0, n_chunks, chunk_body, jnp.zeros((1, 1), jnp.float32))

    if has_targets:
        # Batched cross-entropy over the full tile: one (tile_bt, vp) pass.
        block = dest_ref[...]                            # (tile_bt, vp) f32
        if vocab != vp:                                  # mask padded lanes
            lane_valid = lane_ids < vocab
            block = jnp.where(lane_valid, block, jnp.float32(-1e30))
        m = jnp.max(block, axis=-1, keepdims=True)       # (tile_bt, 1)
        e = jnp.exp(block - m)                           # padded lanes -> 0
        lse = m + jnp.log(jnp.sum(e, axis=-1, keepdims=True))
        # Zero the contribution of wrapper-added padding rows (>= BT).
        row_ids = lax.broadcasted_iota(jnp.int32, (tile_bt, 1), 0) + tile_base
        lse = jnp.where(row_ids < bt, lse, 0.0)
        lse_sum = jnp.sum(lse, axis=0, keepdims=True)    # (1, 1)
        tile_loss = (lse_sum - picked_sum) * jnp.float32(1.0 / bt)
        acc_ref[...] = acc_ref[...] + tile_loss          # carried across steps

        @pl.when(step == nsteps - 1)
        def _finalize():
            loss_ref[0, 0] = jnp.sum(acc_ref[...])       # scalar SMEM output


def bigram_forward(index, targets, table, *, tile_bt=None, return_logits=True):
    """index: (B, T) int; targets: (B, T) int or None; table: (V, V) float32.

    Returns (logits, loss) like the PyTorch module.  return_logits=False
    enables the loss-only fast path (no (BT, V) logits HBM writeback).
    """
    B, T = index.shape
    V = table.shape[0]
    BT = B * T

    has_targets = targets is not None
    want_logits = bool(return_logits) or not has_targets  # inference needs logits

    vp = _round_up(V, LANES)                     # lane-dense padded vocab
    if tile_bt is None:
        tile_bt = min(256, _round_up(BT, SUBLANES))
    tile_bt = max(SUBLANES, _round_up(tile_bt, SUBLANES))
    btp = _round_up(BT, tile_bt)                 # row-padded B*T
    n_tiles = btp // tile_bt

    table_p = jnp.pad(table.astype(jnp.float32), ((0, 0), (0, vp - V)))
    # Clamp token ids: OOB rows would read adjacent VMEM with no bounds check.
    idx_flat = jnp.clip(index.reshape(BT), 0, V - 1).astype(jnp.int32)
    idx_flat = jnp.pad(idx_flat, (0, btp - BT))

    call_args = [idx_flat]
    num_prefetch = 1
    if has_targets:
        tgt_flat = jnp.pad(targets.reshape(BT).astype(jnp.int32), (0, btp - BT))
        call_args.append(tgt_flat)
        num_prefetch = 2
    call_args.append(table_p)

    # Constant block index => the table is DMA'd once and never revisited;
    # single-buffer it once it is big enough for the second buffer to matter.
    table_bytes = V * vp * 4
    if table_bytes > (2 << 20):
        table_spec = pl.BlockSpec((V, vp), lambda i, *_: (0, 0),
                                  pipeline_mode=pl.Buffered(1))
        table_bufs = 1
    else:
        table_spec = pl.BlockSpec((V, vp), lambda i, *_: (0, 0))
        table_bufs = 2

    out_shapes, out_specs = [], []
    if want_logits:
        out_shapes.append(jax.ShapeDtypeStruct((btp, vp), jnp.float32))
        # Lane-dense (tile_bt, 128*k) logits tile per grid step.
        out_specs.append(pl.BlockSpec((tile_bt, vp), lambda i, *_: (i, 0)))
    if has_targets:
        out_shapes.append(jax.ShapeDtypeStruct((1, 1), jnp.float32))
        # Scalar loss exits through SMEM, not a masked VMEM store.
        out_specs.append(pl.BlockSpec(memory_space=pltpu.MemorySpace.SMEM))

    scratch = []
    if not want_logits:
        scratch.append(pltpu.VMEM((tile_bt, vp), jnp.float32))   # gather tile
    if has_targets:
        scratch.append(pltpu.VMEM((1, 1), jnp.float32))          # loss acc

    kernel = functools.partial(
        bigram_kernel, vocab=V, vp=vp, bt=BT, tile_bt=tile_bt,
        has_targets=has_targets, want_logits=want_logits)

    # Explicit VMEM budget: resident table + (double-buffered) logits tile
    # (+ gather scratch).  Raise the scoped limit only when the default
    # (16 MiB v5e / 32 MiB v6e & v7x) would not fit.
    vmem_need = table_bytes * table_bufs
    vmem_need += (2 * tile_bt * vp * 4) if want_logits else (tile_bt * vp * 4)
    vmem_limit = int(vmem_need * 1.25) if vmem_need > (14 << 20) else None

    compiler_params = pltpu.CompilerParams(
        # Loss accumulator is carried across the BT axis -> "arbitrary";
        # the pure-gather inference path has independent tiles -> "parallel".
        dimension_semantics=("arbitrary",) if has_targets else ("parallel",),
        vmem_limit_bytes=vmem_limit,
    )

    outs = pl.pallas_call(
        kernel,
        grid_spec=pltpu.PrefetchScalarGridSpec(
            num_scalar_prefetch=num_prefetch,   # idx (and tgt) live in SMEM
            grid=(n_tiles,),
            in_specs=[table_spec],
            out_specs=tuple(out_specs),
            scratch_shapes=scratch,
        ),
        out_shape=tuple(out_shapes),
        compiler_params=compiler_params,
    )(*call_args)

    logits = None
    loss = None
    k = 0
    if want_logits:
        logits = outs[k][:BT, :V].reshape(B, T, V)
        k += 1
    if has_targets:
        loss = outs[k][0, 0]
    return logits, loss


def bigram_forward_ref(index, targets, table):
    logits = table[index]                         # (B, T, V)
    B, T, V = logits.shape
    lf = logits.reshape(B * T, V)
    tf = targets.reshape(B * T)
    lse = jax.scipy.special.logsumexp(lf, axis=-1)
    picked = jnp.take_along_axis(lf, tf[:, None], axis=-1)[:, 0]
    loss = jnp.mean(lse - picked)
    return logits, loss


if __name__ == "__main__":
    key = jax.random.PRNGKey(0)
    k_tab, k_idx, k_tgt = jax.random.split(key, 3)

    vocab_size = 16
    B, T = 2, 8

    # nn.Embedding(vocab_size, vocab_size) init ~ N(0, 1), deterministic here.
    table = jax.random.normal(k_tab, (vocab_size, vocab_size), dtype=jnp.float32)
    index = jax.random.randint(k_idx, (B, T), 0, vocab_size, dtype=jnp.int32)
    targets = jax.random.randint(k_tgt, (B, T), 0, vocab_size, dtype=jnp.int32)

    logits_ref, loss_ref = bigram_forward_ref(index, targets, table)

    # Training path: logits + loss (single grid step, 2 gather chunks).
    logits, loss = bigram_forward(index, targets, table)
    jax.block_until_ready((logits, loss))
    assert logits.shape == (B, T, vocab_size)
    assert jnp.allclose(logits, logits_ref, atol=1e-5)
    assert jnp.allclose(loss, loss_ref, atol=1e-5)

    # Inference path (targets=None): pure gather+store kernel, no loss math.
    logits_only, none_loss = bigram_forward(index, None, table)
    jax.block_until_ready(logits_only)
    assert none_loss is None
    assert jnp.allclose(logits_only, logits_ref, atol=1e-5)

    # Loss-only path: no (BT, V) logits writeback; tile_bt=8 forces a 2-step
    # grid to exercise the cross-step loss accumulator.
    none_logits, loss_only = bigram_forward(index, targets, table,
                                            tile_bt=8, return_logits=False)
    jax.block_until_ready(loss_only)
    assert none_logits is None
    assert jnp.allclose(loss_only, loss_ref, atol=1e-5)

    print("KERNEL_OK")
</pallas_src>

<mosaic_0001>
module attributes {stable_mosaic.version = 11 : i64} {
  func.func @bigram_kernel(%arg0: i32, %arg1: memref<16xi32, #tpu.memory_space<smem>>, %arg2: memref<16xi32, #tpu.memory_space<smem>>, %arg3: memref<16x128xf32, #tpu.memory_space<vmem>>, %arg4: memref<16x128xf32, #tpu.memory_space<vmem>>, %arg5: memref<1x1xf32, #tpu.memory_space<smem>>, %arg6: memref<1x1xf32, #tpu.memory_space<vmem>>) attributes {dimension_semantics = [#tpu.dimension_semantics<arbitrary>], iteration_bounds = array<i64: 1>, scalar_prefetch = 2 : i64, scratch_operands = 1 : i64, tpu.core_type = #tpu.core_type<tc>, window_params = [{pipeline_mode = #tpu.pipeline_mode<synchronous>, transform_indices = @transform_0, window_bounds = array<i64: 16, 128>}, {transform_indices = @transform_1, window_bounds = array<i64: 16, 128>}, {transform_indices = @transform_2, window_bounds = array<i64: 1, 1>}]} {
    %c16_i32 = arith.constant 16 : i32
    %0 = arith.muli %arg0, %c16_i32 : i32
    %c0_i32 = arith.constant 0 : i32
    %1 = arith.cmpi eq, %arg0, %c0_i32 : i32
    %2 = arith.extui %1 : i1 to i32
    %c0_i32_0 = arith.constant 0 : i32
    %3 = arith.cmpi ne, %2, %c0_i32_0 : i32
    scf.if %3 {
      %cst_18 = arith.constant 0.000000e+00 : f32
      %42 = vector.broadcast %cst_18 : f32 to vector<1x1xf32>
      %c0_19 = arith.constant 0 : index
      %c0_20 = arith.constant 0 : index
      %43 = vector.load %arg6[%c0_19, %c0_20] : memref<1x1xf32, #tpu.memory_space<vmem>>, vector<1x1xf32>
      tpu.vector_store %arg6[%c0_19, %c0_20], %42 {strides = array<i32>} : memref<1x1xf32, #tpu.memory_space<vmem>>, vector<1x1xf32>,
    } else {
    }
    %4 = tpu.iota {dimensions = array<i32: 1>} : vector<1x128xi32>
    %cst = arith.constant 0.000000e+00 : f32
    %5 = vector.broadcast %cst : f32 to vector<1x1xf32>
    %c0_i32_1 = arith.constant 0 : i32
    %c2_i32 = arith.constant 2 : i32
    %6 = arith.addi %c0_i32_1, %c2_i32 : i32
    %c1_i32 = arith.constant 1 : i32
    %7 = scf.for %arg7 = %c0_i32_1 to %6 step %c1_i32 iter_args(%arg8 = %5) -> (vector<1x1xf32>)  : i32 {
      %c8_i32 = arith.constant 8 : i32
      %42 = arith.muli %arg7, %c8_i32 : i32
      %43 = tpu.assume_multiple %42, 8 : i32
      %44 = arith.addi %0, %43 : i32
      %c0_i32_18 = arith.constant 0 : i32
      %45 = arith.addi %44, %c0_i32_18 : i32
      %46 = arith.index_cast %45 : i32 to index
      %47 = memref.load %arg1[%46] : memref<16xi32, #tpu.memory_space<smem>>
      %48 = arith.index_cast %47 : i32 to index
      %c0_19 = arith.constant 0 : index
      %49 = vector.load %arg3[%48, %c0_19] : memref<16x128xf32, #tpu.memory_space<vmem>>, vector<1x128xf32>
      %50 = arith.index_cast %45 : i32 to index
      %51 = memref.load %arg2[%50] : memref<16xi32, #tpu.memory_space<smem>>
      %c16_i32_20 = arith.constant 16 : i32
      %52 = arith.cmpi slt, %45, %c16_i32_20 : i32
      %53 = vector.broadcast %51 : i32 to vector<1x128xi32>
      %54 = arith.cmpi eq, %4, %53 : vector<1x128xi32>
      %55 = vector.broadcast %52 : i1 to vector<1x128xi1>
      %56 = arith.andi %54, %55 : vector<1x128xi1>
      %cst_21 = arith.constant 1.000000e+00 : f32
      %cst_22 = arith.constant 0.000000e+00 : f32
      %57 = vector.broadcast %cst_21 : f32 to vector<1x128xf32>
      %58 = vector.broadcast %cst_22 : f32 to vector<1x128xf32>
      %59 = arith.select %56, %57, %58 : vector<1x128xi1>, vector<1x128xf32>
      %60 = arith.addi %0, %43 : i32
      %c1_i32_23 = arith.constant 1 : i32
      %61 = arith.addi %60, %c1_i32_23 : i32
      %62 = arith.index_cast %61 : i32 to index
      %63 = memref.load %arg1[%62] : memref<16xi32, #tpu.memory_space<smem>>
      %64 = arith.index_cast %63 : i32 to index
      %c0_24 = arith.constant 0 : index
      %65 = vector.load %arg3[%64, %c0_24] : memref<16x128xf32, #tpu.memory_space<vmem>>, vector<1x128xf32>
      %66 = arith.index_cast %61 : i32 to index
      %67 = memref.load %arg2[%66] : memref<16xi32, #tpu.memory_space<smem>>
      %c16_i32_25 = arith.constant 16 : i32
      %68 = arith.cmpi slt, %61, %c16_i32_25 : i32
      %69 = vector.broadcast %67 : i32 to vector<1x128xi32>
      %70 = arith.cmpi eq, %4, %69 : vector<1x128xi32>
      %71 = vector.broadcast %68 : i1 to vector<1x128xi1>
      %72 = arith.andi %70, %71 : vector<1x128xi1>
      %cst_26 = arith.constant 1.000000e+00 : f32
      %cst_27 = arith.constant 0.000000e+00 : f32
      %73 = vector.broadcast %cst_26 : f32 to vector<1x128xf32>
      %74 = vector.broadcast %cst_27 : f32 to vector<1x128xf32>
      %75 = arith.select %72, %73, %74 : vector<1x128xi1>, vector<1x128xf32>
      %76 = arith.addi %0, %43 : i32
      %c2_i32_28 = arith.constant 2 : i32
      %77 = arith.addi %76, %c2_i32_28 : i32
      %78 = arith.index_cast %77 : i32 to index
      %79 = memref.load %arg1[%78] : memref<16xi32, #tpu.memory_space<smem>>
      %80 = arith.index_cast %79 : i32 to index
      %c0_29 = arith.constant 0 : index
      %81 = vector.load %arg3[%80, %c0_29] : memref<16x128xf32, #tpu.memory_space<vmem>>, vector<1x128xf32>
      %82 = arith.index_cast %77 : i32 to index
      %83 = memref.load %arg2[%82] : memref<16xi32, #tpu.memory_space<smem>>
      %c16_i32_30 = arith.constant 16 : i32
      %84 = arith.cmpi slt, %77, %c16_i32_30 : i32
      %85 = vector.broadcast %83 : i32 to vector<1x128xi32>
      %86 = arith.cmpi eq, %4, %85 : vector<1x128xi32>
      %87 = vector.broadcast %84 : i1 to vector<1x128xi1>
      %88 = arith.andi %86, %87 : vector<1x128xi1>
      %cst_31 = arith.constant 1.000000e+00 : f32
      %cst_32 = arith.constant 0.000000e+00 : f32
      %89 = vector.broadcast %cst_31 : f32 to vector<1x128xf32>
      %90 = vector.broadcast %cst_32 : f32 to vector<1x128xf32>
      %91 = arith.select %88, %89, %90 : vector<1x128xi1>, vector<1x128xf32>
      %92 = arith.addi %0, %43 : i32
      %c3_i32 = arith.constant 3 : i32
      %93 = arith.addi %92, %c3_i32 : i32
      %94 = arith.index_cast %93 : i32 to index
      %95 = memref.load %arg1[%94] : memref<16xi32, #tpu.memory_space<smem>>
      %96 = arith.index_cast %95 : i32 to index
      %c0_33 = arith.constant 0 : index
      %97 = vector.load %arg3[%96, %c0_33] : memref<16x128xf32, #tpu.memory_space<vmem>>, vector<1x128xf32>
      %98 = arith.index_cast %93 : i32 to index
      %99 = memref.load %arg2[%98] : memref<16xi32, #tpu.memory_space<smem>>
      %c16_i32_34 = arith.constant 16 : i32
      %100 = arith.cmpi slt, %93, %c16_i32_34 : i32
      %101 = vector.broadcast %99 : i32 to vector<1x128xi32>
      %102 = arith.cmpi eq, %4, %101 : vector<1x128xi32>
      %103 = vector.broadcast %100 : i1 to vector<1x128xi1>
      %104 = arith.andi %102, %103 : vector<1x128xi1>
      %cst_35 = arith.constant 1.000000e+00 : f32
      %cst_36 = arith.constant 0.000000e+00 : f32
      %105 = vector.broadcast %cst_35 : f32 to vector<1x128xf32>
      %106 = vector.broadcast %cst_36 : f32 to vector<1x128xf32>
      %107 = arith.select %104, %105, %106 : vector<1x128xi1>, vector<1x128xf32>
      %108 = arith.addi %0, %43 : i32
      %c4_i32 = arith.constant 4 : i32
      %109 = arith.addi %108, %c4_i32 : i32
      %110 = arith.index_cast %109 : i32 to index
      %111 = memref.load %arg1[%110] : memref<16xi32, #tpu.memory_space<smem>>
      %112 = arith.index_cast %111 : i32 to index
      %c0_37 = arith.constant 0 : index
      %113 = vector.load %arg3[%112, %c0_37] : memref<16x128xf32, #tpu.memory_space<vmem>>, vector<1x128xf32>
      %114 = arith.index_cast %109 : i32 to index
      %115 = memref.load %arg2[%114] : memref<16xi32, #tpu.memory_space<smem>>
      %c16_i32_38 = arith.constant 16 : i32
      %116 = arith.cmpi slt, %109, %c16_i32_38 : i32
      %117 = vector.broadcast %115 : i32 to vector<1x128xi32>
      %118 = arith.cmpi eq, %4, %117 : vector<1x128xi32>
      %119 = vector.broadcast %116 : i1 to vector<1x128xi1>
      %120 = arith.andi %118, %119 : vector<1x128xi1>
      %cst_39 = arith.constant 1.000000e+00 : f32
      %cst_40 = arith.constant 0.000000e+00 : f32
      %121 = vector.broadcast %cst_39 : f32 to vector<1x128xf32>
      %122 = vector.broadcast %cst_40 : f32 to vector<1x128xf32>
      %123 = arith.select %120, %121, %122 : vector<1x128xi1>, vector<1x128xf32>
      %124 = arith.addi %0, %43 : i32
      %c5_i32 = arith.constant 5 : i32
      %125 = arith.addi %124, %c5_i32 : i32
      %126 = arith.index_cast %125 : i32 to index
      %127 = memref.load %arg1[%126] : memref<16xi32, #tpu.memory_space<smem>>
      %128 = arith.index_cast %127 : i32 to index
      %c0_41 = arith.constant 0 : index
      %129 = vector.load %arg3[%128, %c0_41] : memref<16x128xf32, #tpu.memory_space<vmem>>, vector<1x128xf32>
      %130 = arith.index_cast %125 : i32 to index
      %131 = memref.load %arg2[%130] : memref<16xi32, #tpu.memory_space<smem>>
      %c16_i32_42 = arith.constant 16 : i32
      %132 = arith.cmpi slt, %125, %c16_i32_42 : i32
      %133 = vector.broadcast %131 : i32 to vector<1x128xi32>
      %134 = arith.cmpi eq, %4, %133 : vector<1x128xi32>
      %135 = vector.broadcast %132 : i1 to vector<1x128xi1>
      %136 = arith.andi %134, %135 : vector<1x128xi1>
      %cst_43 = arith.constant 1.000000e+00 : f32
      %cst_44 = arith.constant 0.000000e+00 : f32
      %137 = vector.broadcast %cst_43 : f32 to vector<1x128xf32>
      %138 = vector.broadcast %cst_44 : f32 to vector<1x128xf32>
      %139 = arith.select %136, %137, %138 : vector<1x128xi1>, vector<1x128xf32>
      %140 = arith.addi %0, %43 : i32
      %c6_i32 = arith.constant 6 : i32
      %141 = arith.addi %140, %c6_i32 : i32
      %142 = arith.index_cast %141 : i32 to index
      %143 = memref.load %arg1[%142] : memref<16xi32, #tpu.memory_space<smem>>
      %144 = arith.index_cast %143 : i32 to index
      %c0_45 = arith.constant 0 : index
      %145 = vector.load %arg3[%144, %c0_45] : memref<16x128xf32, #tpu.memory_space<vmem>>, vector<1x128xf32>
      %146 = arith.index_cast %141 : i32 to index
      %147 = memref.load %arg2[%146] : memref<16xi32, #tpu.memory_space<smem>>
      %c16_i32_46 = arith.constant 16 : i32
      %148 = arith.cmpi slt, %141, %c16_i32_46 : i32
      %149 = vector.broadcast %147 : i32 to vector<1x128xi32>
      %150 = arith.cmpi eq, %4, %149 : vector<1x128xi32>
      %151 = vector.broadcast %148 : i1 to vector<1x128xi1>
      %152 = arith.andi %150, %151 : vector<1x128xi1>
      %cst_47 = arith.constant 1.000000e+00 : f32
      %cst_48 = arith.constant 0.000000e+00 : f32
      %153 = vector.broadcast %cst_47 : f32 to vector<1x128xf32>
      %154 = vector.broadcast %cst_48 : f32 to vector<1x128xf32>
      %155 = arith.select %152, %153, %154 : vector<1x128xi1>, vector<1x128xf32>
      %156 = arith.addi %0, %43 : i32
      %c7_i32 = arith.constant 7 : i32
      %157 = arith.addi %156, %c7_i32 : i32
      %158 = arith.index_cast %157 : i32 to index
      %159 = memref.load %arg1[%158] : memref<16xi32, #tpu.memory_space<smem>>
      %160 = arith.index_cast %159 : i32 to index
      %c0_49 = arith.constant 0 : index
      %161 = vector.load %arg3[%160, %c0_49] : memref<16x128xf32, #tpu.memory_space<vmem>>, vector<1x128xf32>
      %162 = arith.index_cast %157 : i32 to index
      %163 = memref.load %arg2[%162] : memref<16xi32, #tpu.memory_space<smem>>
      %c16_i32_50 = arith.constant 16 : i32
      %164 = arith.cmpi slt, %157, %c16_i32_50 : i32
      %165 = vector.broadcast %163 : i32 to vector<1x128xi32>
      %166 = arith.cmpi eq, %4, %165 : vector<1x128xi32>
      %167 = vector.broadcast %164 : i1 to vector<1x128xi1>
      %168 = arith.andi %166, %167 : vector<1x128xi1>
      %cst_51 = arith.constant 1.000000e+00 : f32
      %cst_52 = arith.constant 0.000000e+00 : f32
      %169 = vector.broadcast %cst_51 : f32 to vector<1x128xf32>
      %170 = vector.broadcast %cst_52 : f32 to vector<1x128xf32>
      %171 = arith.select %168, %169, %170 : vector<1x128xi1>, vector<1x128xf32>
      %172 = tpu.concatenate %49, %65, %81, %97, %113, %129, %145, %161 in 0 : vector<1x128xf32>, vector<1x128xf32>, vector<1x128xf32>, vector<1x128xf32>, vector<1x128xf32>, vector<1x128xf32>, vector<1x128xf32>, vector<1x128xf32> -> vector<8x128xf32>
      %173 = arith.index_cast %43 : i32 to index
      %c0_53 = arith.constant 0 : index
      %174 = vector.load %arg4[%173, %c0_53] : memref<16x128xf32, #tpu.memory_space<vmem>>, vector<8x128xf32>
      tpu.vector_store %arg4[%173, %c0_53], %172 {strides = array<i32>} : memref<16x128xf32, #tpu.memory_space<vmem>>, vector<8x128xf32>,
      %175 = tpu.concatenate %59, %75, %91, %107, %123, %139, %155, %171 in 0 : vector<1x128xf32>, vector<1x128xf32>, vector<1x128xf32>, vector<1x128xf32>, vector<1x128xf32>, vector<1x128xf32>, vector<1x128xf32>, vector<1x128xf32> -> vector<8x128xf32>
      %176 = arith.mulf %175, %172 : vector<8x128xf32>
      %cst_54 = arith.constant dense<0.000000e+00> : vector<8xf32>
      %177 = vector.multi_reduction <add>, %176, %cst_54 [1] : vector<8x128xf32> to vector<8xf32>
      %178 = vector.shape_cast %177 : vector<8xf32> to vector<8x1xf32>
      %cst_55 = arith.constant dense<0.000000e+00> : vector<1xf32>
      %179 = vector.multi_reduction <add>, %178, %cst_55 [0] : vector<8x1xf32> to vector<1xf32>
      %180 = vector.shape_cast %179 : vector<1xf32> to vector<1x1xf32>
      %181 = arith.addf %arg8, %180 : vector<1x1xf32>
      scf.yield %181 : vector<1x1xf32>
    }
    %c2_i32_2 = arith.constant 2 : i32
    %c0 = arith.constant 0 : index
    %c0_3 = arith.constant 0 : index
    %8 = vector.load %arg4[%c0, %c0_3] : memref<16x128xf32, #tpu.memory_space<vmem>>, vector<16x128xf32>
    %c16_i32_4 = arith.constant 16 : i32
    %9 = vector.broadcast %c16_i32_4 : i32 to vector<1x128xi32>
    %10 = arith.cmpi slt, %4, %9 : vector<1x128xi32>
    %cst_5 = arith.constant -1.000000e+30 : f32
    %11 = vector.shape_cast %10 : vector<1x128xi1> to vector<1x128xi1>
    %12 = vector.broadcast %11 : vector<1x128xi1> to vector<16x128xi1>
    %13 = vector.broadcast %cst_5 : f32 to vector<16x128xf32>
    %14 = arith.select %12, %8, %13 : vector<16x128xi1>, vector<16x128xf32>
    %cst_6 = arith.constant dense<0xFF800000> : vector<16xf32>
    %15 = vector.multi_reduction <maximumf>, %14, %cst_6 [1] : vector<16x128xf32> to vector<16xf32>
    %16 = vector.shape_cast %15 : vector<16xf32> to vector<16x1xf32>
    %17 = vector.broadcast %16 : vector<16x1xf32> to vector<16x128xf32>
    %18 = arith.subf %14, %17 : vector<16x128xf32>
    %19 = math.exp %18 : vector<16x128xf32>
    %cst_7 = arith.constant dense<0.000000e+00> : vector<16xf32>
    %20 = vector.multi_reduction <add>, %19, %cst_7 [1] : vector<16x128xf32> to vector<16xf32>
    %21 = vector.shape_cast %20 : vector<16xf32> to vector<16x1xf32>
    %22 = math.log %21 : vector<16x1xf32>
    %23 = arith.addf %16, %22 : vector<16x1xf32>
    %24 = tpu.iota {dimensions = array<i32: 0>} : vector<16x1xi32>
    %25 = vector.broadcast %0 : i32 to vector<16x1xi32>
    %26 = arith.addi %24, %25 : vector<16x1xi32>
    %c16_i32_8 = arith.constant 16 : i32
    %27 = vector.broadcast %c16_i32_8 : i32 to vector<16x1xi32>
    %28 = arith.cmpi slt, %26, %27 : vector<16x1xi32>
    %cst_9 = arith.constant 0.000000e+00 : f32
    %29 = vector.broadcast %cst_9 : f32 to vector<16x1xf32>
    %30 = arith.select %28, %23, %29 : vector<16x1xi1>, vector<16x1xf32>
    %cst_10 = arith.constant dense<0.000000e+00> : vector<1xf32>
    %31 = vector.multi_reduction <add>, %30, %cst_10 [0] : vector<16x1xf32> to vector<1xf32>
    %32 = vector.shape_cast %31 : vector<1xf32> to vector<1x1xf32>
    %33 = arith.subf %32, %7 : vector<1x1xf32>
    %cst_11 = arith.constant 6.250000e-02 : f32
    %34 = vector.broadcast %cst_11 : f32 to vector<1x1xf32>
    %35 = arith.mulf %33, %34 : vector<1x1xf32>
    %c0_12 = arith.constant 0 : index
    %c0_13 = arith.constant 0 : index
    %36 = vector.load %arg6[%c0_12, %c0_13] : memref<1x1xf32, #tpu.memory_space<vmem>>, vector<1x1xf32>
    %37 = arith.addf %36, %35 : vector<1x1xf32>
    %c0_14 = arith.constant 0 : index
    %c0_15 = arith.constant 0 : index
    %38 = vector.load %arg6[%c0_14, %c0_15] : memref<1x1xf32, #tpu.memory_space<vmem>>, vector<1x1xf32>
    tpu.vector_store %arg6[%c0_14, %c0_15], %37 {strides = array<i32>} : memref<1x1xf32, #tpu.memory_space<vmem>>, vector<1x1xf32>,
    %c0_i32_16 = arith.constant 0 : i32
    %39 = arith.cmpi eq, %arg0, %c0_i32_16 : i32
    %40 = arith.extui %39 : i1 to i32
    %c0_i32_17 = arith.constant 0 : i32
    %41 = arith.cmpi ne, %40, %c0_i32_17 : i32
    scf.if %41 {
      %c0_18 = arith.constant 0 : index
      %c0_19 = arith.constant 0 : index
      %42 = vector.load %arg6[%c0_18, %c0_19] : memref<1x1xf32, #tpu.memory_space<vmem>>, vector<1x1xf32>
      %43 = vector.shape_cast %42 : vector<1x1xf32> to vector<1x1x1xf32>
      %cst_20 = arith.constant dense<0.000000e+00> : vector<1xf32>
      %44 = vector.multi_reduction <add>, %43, %cst_20 [1, 2] : vector<1x1x1xf32> to vector<1xf32>
      %45 = vector.shape_cast %44 : vector<1xf32> to vector<1x1x1xf32>
      %46 = vector.extract %45[0, 0, 0] : f32 from vector<1x1x1xf32>
      %c0_21 = arith.constant 0 : index
      %c0_22 = arith.constant 0 : index
      %47 = memref.load %arg5[%c0_21, %c0_22] : memref<1x1xf32, #tpu.memory_space<smem>>
      memref.store %46, %arg5[%c0_21, %c0_22] : memref<1x1xf32, #tpu.memory_space<smem>>
    } else {
    }
    return
  }
  func.func @transform_0(%arg0: i32, %arg1: memref<16xi32, #tpu.memory_space<smem>>, %arg2: memref<16xi32, #tpu.memory_space<smem>>) -> (i32, i32) {
    %c0_i32 = arith.constant 0 : i32
    %c0_i32_0 = arith.constant 0 : i32
    %c0_i32_1 = arith.constant 0 : i32
    return %c0_i32, %c0_i32_0 : i32, i32
  }
  func.func @transform_1(%arg0: i32, %arg1: memref<16xi32, #tpu.memory_space<smem>>, %arg2: memref<16xi32, #tpu.memory_space<smem>>) -> (i32, i32) {
    %c0_i32 = arith.constant 0 : i32
    %c0_i32_0 = arith.constant 0 : i32
    return %arg0, %c0_i32 : i32, i32
  }
  func.func @transform_2(%arg0: i32, %arg1: memref<16xi32, #tpu.memory_space<smem>>, %arg2: memref<16xi32, #tpu.memory_space<smem>>) -> (i32, i32) {
    %c0_i32 = arith.constant 0 : i32
    %c0_i32_0 = arith.constant 0 : i32
    %c0_i32_1 = arith.constant 0 : i32
    return %c0_i32, %c0_i32_0 : i32, i32
  }
}

</mosaic_0001>

<bundles_post_ra>
// kernel: tpu_custom_call.1
= control target key start
LH: loop header
LB: loop body
LE: loop exit
PB: predicated region body
PF: predicated region fallthrough
CT: control target
= control target key end

     0   :  { %s472_s21 = smov [#allocation4]   ;;  %s473_s22 = smov [#allocation5]   ;;  %s676_s0 = inlined_call_operand.hbm [shape: s32[16], index: 0, kind: input, shape index: {}]   ;;  %s677_s2 = inlined_call_operand.hbm [shape: f32[16,128], index: 2, kind: input, shape index: {}]   ;;  %s678_s3 = inlined_call_operand.hbm [shape: f32[16,128], index: 3, kind: output, shape index: {0}]   ;;  %s679_s4 = inlined_call_operand.hbm [shape: f32[1,1], index: 4, kind: output, shape index: {1}]   ;;  %s680_s1 = inlined_call_operand.hbm [shape: s32[16], index: 1, kind: input, shape index: {}]  }
   0x1   :  { %s11_s17 = sshll.u32 %s676_s0, 4  ;;  %s16_s20 = sshll.u32 %s680_s1, 4  ;;  %s12_s17 = int_to_ptr.hbm [resolvable:$true] %s11_s17  ;;  %s17_s20 = int_to_ptr.hbm [resolvable:$true] %s16_s20 }
   0x2   :  { %14 = dma.hbm_to_smem %s12_s17, 16, %s472_s21, [#allocation3] }
   0x3   :  { %19 = dma.hbm_to_smem %s17_s20, 16, %s473_s22, [#allocation3] }
   0x4   :  { %456 = dma.done.wait [#allocation3], 32 }
   0x5   :  { %457 = vsyncadd [#allocation3], 4294967264 }
   0x6   :  { %22 = sfence }
   0x7   :  { %23 = vsyncpa [#allocation7], 0 }
   0x8   :  { %24 = vsyncpa [#allocation8], 0 }
   0x9   :  { %25 = vsyncpa [#allocation9], 0  ;;  %s30_s0 = sshll.u32 %s677_s2, 4  ;;  %s474_s25 = smov [#allocation6]   ;;  %s31_s0 = int_to_ptr.hbm [resolvable:$true] %s30_s0 }
   0xa   :  { %s32_s26 = sshll.u32 %s474_s25, 4  ;;  %s475_s1 = smov 128   ;;  %s33_s26 = int_to_ptr.vmem [resolvable:$true] %s32_s26 }
   0xb   :  { %s476_s27 = smov 8  }
   0xc   :  { %38 = dma.hbm_to_vmem [thread:$0]  %s31_s0, 256, %s33_s26, [#allocation7], %s475_s1, %s475_s1, %s476_s27  }
   0xd   :  { %458 = dma.done.wait [#allocation7], 256  }
   0xe   :  { %459 = vsyncadd [#allocation7], 4294967040  ;;  %vm48_vm0 = vcmask 0   ;;  %v50_v0 = vlaneseq  ;;  %v477_v1 = vmov 0.0   ;;  %v521_v3 = vmov 0.0   ;;  %s523_s2 = smov 0  }
   0xf   :  { %49 = vst.msk [vmem:[#allocation2] sm:$0x1] %vm48_vm0, %v477_v1 }
  0x10   :  { %v519_v2 = vand.u32 127, %v50_v0 }
  0x11 LB: > { %s532_s28 = sshll.u32 %s470_s2, 3  ;;  %vm185_vm8 = vcmask 1040384   ;;  %v478_v19 = vmov 0.0   ;;  %vm187_vm12 = vcmask 1041408   ;;  %s57_s2 = sadd.s32 1, %s470_s2   ;;  %s470_s2 = sphi %s523_s2, %s57_s2   ;;  %v466_v3 = vphi %v521_v3, %v699_v3  }
  0x12   : > { %s535_s29 = sld [smem:[#allocation4 + %s532_s28]]  ;;  %p65_p0 = scmp.lt.s32.totalorder %s532_s28, 16 }
  0x13   : > { %s64_s30 = sld [smem:[#allocation5 + %s532_s28]]  ;;  %s73_s5 = sadd.s32 1, %s532_s28 }
  0x14   : > { %s68_s6 = scalar_select %p65_p0, 1, 0 }
  0x15   : > { %s74_s7 = sld [smem:[#allocation4 + %s73_s5]]  ;;  %p78_p1 = scmp.lt.s32.totalorder %s73_s5, 16 }
  0x16   : > { %s77_s8 = sld [smem:[#allocation5 + %s73_s5]]  ;;  %s86_s9 = sadd.s32 2, %s532_s28  ;;  %v69_v4 = vstv %s68_s6 }
  0x17   : > { %s81_s10 = scalar_select %p78_p1, 1, 0  ;;  %vm548_vm2 = vcmp.eq.s32.totalorder %v69_v4, 1 }
  0x18   : > { %s87_s11 = sld [smem:[#allocation4 + %s86_s9]]  ;;  %p91_p2 = scmp.lt.s32.totalorder %s86_s9, 16 }
  0x19   : > { %v66_v5 = vstv %s64_s30  ;;  %v82_v6 = vstv %s81_s10  ;;  %s541_s12 = sld [smem:[#allocation5 + %s86_s9]]  ;;  %s99_s13 = sadd.s32 3, %s532_s28 }
  0x1a   : > { %vm544_vm1 = vcmp.eq.s32.totalorder %v519_v2, %v66_v5  ;;  %s554_s14 = sadd.s32 4, %s532_s28  ;;  %vm556_vm3 = vcmp.eq.s32.totalorder %v82_v6, 1  ;;  %s560_s15 = sld [smem:[#allocation4 + %s99_s13]] }
  0x1b   : > { %s75_s16 = scalar_lea.vmem [#allocation6], %s74_s7  ;;  %vm71_vm4 = vmand %vm544_vm1, %vm548_vm2  ;;  %s571_s18 = sld [smem:[#allocation5 + %s99_s13]]  ;;  %vm189_vm1 = vcmask 1042432  }
  0x1c   : > { %v76_v10 = vld [vmem:[%s75_s16] sm:$0x1]  ;;  %v79_v11 = vstv %s77_s8  ;;  %s94_s17 = scalar_select %p91_p2, 1, 0  ;;  %v72_v20 = vsel %vm71_vm4, 1.0, %v478_v19  ;;  %vm191_vm4 = vcmask 1043456  }
  0x1d   : > { %vm567_vm5 = vcmp.eq.s32.totalorder %v519_v2, %v79_v11  ;;  %p104_p3 = scmp.lt.s32.totalorder %s99_s13, 16  ;;  %s62_s19 = scalar_lea.vmem [#allocation6], %s535_s29  ;;  %v165_v15 = vrot.slane %v76_v10, 7 }
  0x1e   : > { %v63_v13 = vld [vmem:[%s62_s19] sm:$0x1]  ;;  %vm84_vm6 = vmand %vm567_vm5, %vm556_vm3  ;;  %v95_v14 = vstv %s94_s17  ;;  %s579_s20 = sld [smem:[#allocation4 + %s554_s14]]  ;;  %s88_s21 = scalar_lea.vmem [#allocation6], %s87_s11 }
  0x1f   : > { %v89_v16 = vld [vmem:[%s88_s21] sm:$0x1]  ;;  %v92_v17 = vstv %s541_s12  ;;  %vm582_vm7 = vcmp.eq.s32.totalorder %v95_v14, 1  ;;  %s107_s22 = scalar_select %p104_p3, 1, 0  ;;  %v85_v21 = vsel %vm84_vm6, 1.0, %v478_v19  ;;  %v186_v26 = vsel %vm185_vm8, %v63_v13, %v165_v15 }
  0x20   : > { %vm93_vm9 = vcmp.eq.s32.totalorder %v519_v2, %v92_v17  ;;  %s595_s23 = sld [smem:[#allocation5 + %s554_s14]]  ;;  %p117_p4 = scmp.lt.s32.totalorder %s554_s14, 16  ;;  %v168_v23 = vrot.slane %v89_v16, 6  ;;  %v201_v29 = vsel %vm185_vm8, %v72_v20, %v85_v21 }
  0x21   : > { %vm97_vm10 = vmand %vm93_vm9, %vm582_vm7  ;;  %v108_v22 = vstv %s107_s22  ;;  %s125_s24 = sadd.s32 5, %s532_s28  ;;  %s101_s0 = scalar_lea.vmem [#allocation6], %s560_s15  ;;  %v105_v28 = vstv %s571_s18  ;;  %vm193_vm7 = vcmask 1044480  }
  0x22   : > { %v102_v24 = vld [vmem:[%s101_s0] sm:$0x1]  ;;  %vm602_vm11 = vcmp.eq.s32.totalorder %v108_v22, 1  ;;  %s120_s25 = scalar_select %p117_p4, 1, 0  ;;  %v98_v27 = vsel %vm97_vm10, 1.0, %v478_v19  ;;  %vm106_vm13 = vcmp.eq.s32.totalorder %v519_v2, %v105_v28  ;;  %v188_v34 = vsel %vm187_vm12, %v186_v26, %v168_v23 }
  0x23   : > { %s609_s26 = sld [smem:[#allocation4 + %s125_s24]]  ;;  %p130_p5 = scmp.lt.s32.totalorder %s125_s24, 16  ;;  %v171_v31 = vrot.slane %v102_v24, 5  ;;  %vm110_vm14 = vmand %vm106_vm13, %vm602_vm11  ;;  %v202_v37 = vsel %vm187_vm12, %v201_v29, %v98_v27  ;;  %vm195_vm10 = vcmask 1045504  }
  0x24   : > { %v121_v30 = vstv %s120_s25  ;;  %s613_s29 = sld [smem:[#allocation5 + %s125_s24]]  ;;  %s114_s30 = scalar_lea.vmem [#allocation6], %s579_s20  ;;  %v111_v35 = vsel %vm110_vm14, 1.0, %v478_v19  ;;  %vm197_vm14 = vcmask 1046528  }
  0x25   : > { %v115_v32 = vld [vmem:[%s114_s30] sm:$0x1]  ;;  %vm618_vm15 = vcmp.eq.s32.totalorder %v121_v30, 1  ;;  %s133_s5 = scalar_select %p130_p5, 1, 0  ;;  %v190_v40 = vsel %vm189_vm1, %v188_v34, %v171_v31  ;;  %v203_v43 = vsel %vm189_vm1, %v202_v37, %v111_v35 }
  0x26   : > { %v118_v36 = vstv %s595_s23  ;;  %s138_s6 = sadd.s32 6, %s532_s28  ;;  %s151_s7 = sadd.s32 7, %s532_s28  ;;  %v174_v39 = vrot.slane %v115_v32, 4 }
  0x27   : > { %vm119_vm2 = vcmp.eq.s32.totalorder %v519_v2, %v118_v36  ;;  %v134_v38 = vstv %s133_s5  ;;  %s139_s8 = sld [smem:[#allocation4 + %s138_s6]]  ;;  %p143_p6 = scmp.lt.s32.totalorder %s138_s6, 16 }
  0x28   : > { %vm123_vm3 = vmand %vm119_vm2, %vm618_vm15  ;;  %s142_s9 = sld [smem:[#allocation5 + %s138_s6]]  ;;  %p156_p7 = scmp.lt.s32.totalorder %s151_s7, 16  ;;  %vm633_vm5 = vcmp.eq.s32.totalorder %v134_v38, 1  ;;  %v192_v47 = vsel %vm191_vm4, %v190_v40, %v174_v39 }
  0x29   : > { %v124_v41 = vsel %vm123_vm3, 1.0, %v478_v19  ;;  %s152_s10 = sld [smem:[#allocation4 + %s151_s7]]  ;;  %s127_s11 = scalar_lea.vmem [#allocation6], %s609_s26 }
  0x2a   : > { %v128_v44 = vld [vmem:[%s127_s11] sm:$0x1]  ;;  %v131_v45 = vstv %s613_s29  ;;  %s146_s12 = scalar_select %p143_p6, 1, 0  ;;  %v204_v49 = vsel %vm191_vm4, %v203_v43, %v124_v41 }
  0x2b   : > { %vm132_vm6 = vcmp.eq.s32.totalorder %v519_v2, %v131_v45  ;;  %s155_s13 = sld [smem:[#allocation5 + %s151_s7]]  ;;  %v177_v46 = vrot.slane %v128_v44, 3  ;;  %s199_s17 = scalar_lea.vmem [#allocation10], %s532_s28 }
  0x2c   : > { %vm136_vm8 = vmand %vm132_vm6, %vm633_vm5  ;;  %v147_v48 = vstv %s146_s12  ;;  %s159_s14 = scalar_select %p156_p7, 1, 0 }
  0x2d   : > { %v137_v50 = vsel %vm136_vm8, 1.0, %v478_v19  ;;  %vm648_vm9 = vcmp.eq.s32.totalorder %v147_v48, 1  ;;  %s140_s15 = scalar_lea.vmem [#allocation6], %s139_s8  ;;  %v194_v55 = vsel %vm193_vm7, %v192_v47, %v177_v46  ;;  %p54_p8 = scmp.ge.s32.totalorder %s57_s2, 2  }
  0x2e   : > { %v141_v52 = vld [vmem:[%s140_s15] sm:$0x1]  ;;  %v144_v53 = vstv %s142_s9  ;;  %v160_v54 = vstv %s159_s14  ;;  %v205_v57 = vsel %vm193_vm7, %v204_v49, %v137_v50  ;;  %vm220_vm2 = vcmp.lt.s32.totalorder (%p54_p8), %v519_v2, 16  ;;  %s479_s2 = smov (%p54_p8), [#allocation10]   ;;  %s282_s20 = sshll.u32 (%p54_p8), %s678_s3, 4  ;;  %s283_s20 = int_to_ptr.hbm [resolvable:$true] %s282_s20 }
  0x2f   : > { %vm145_vm11 = vcmp.eq.s32.totalorder %v519_v2, %v144_v53  ;;  %v180_v56 = vrot.slane %v141_v52, 2  ;;  %s153_s16 = scalar_lea.vmem [#allocation6], %s152_s10  ;;  %vm161_vm13 = vcmp.eq.s32.totalorder %v160_v54, 1  ;;  %s280_s28 = sshll.u32 (%p54_p8), %s479_s2, 4  ;;  %v264_v40 = vld [vmem:[#allocation2] sm:$0x1] (%p54_p8)  ;;  %s281_s28 = int_to_ptr.vmem [resolvable:$true] %s280_s28 }
  0x30   : > { %vm149_vm12 = vmand %vm145_vm11, %vm648_vm9  ;;  %v154_v58 = vld [vmem:[%s153_s16] sm:$0x1]  ;;  %s480_s22 = smov (%p54_p8), [#allocation11]  }
  0x31   : > { %v150_v59 = vsel %vm149_vm12, 1.0, %v478_v19  ;;  %v157_v60 = vstv %s155_s13  ;;  %v183_v61 = vrot.slane %v154_v58, 1  ;;  %v196_v62 = vsel %vm195_vm10, %v194_v55, %v180_v56 }
  0x32   : > { %vm158_vm15 = vcmp.eq.s32.totalorder %v519_v2, %v157_v60  ;;  %v206_v63 = vsel %vm195_vm10, %v205_v57, %v150_v59 }
  0x33   : > { %vm162_vm1 = vmand %vm158_vm15, %vm161_vm13  ;;  %v198_v0 = vsel %vm197_vm14, %v196_v62, %v183_v61 }
  0x34   : > { %v163_v1 = vsel %vm162_vm1, 1.0, %v478_v19  ;;  %200 = vst [vmem:[%s199_s17] sm:$0xff] %v198_v0 }
  0x35   : > { %v207_v4 = vsel %vm197_vm14, %v206_v63, %v163_v1  ;;  %288 = dma.vmem_to_hbm [thread:$0]  (%p54_p8), %s281_s28, 256, %s283_s20, [#allocation8], %s475_s1, %s475_s1, %s476_s27  }
  0x36   : > { %v208_v5 = vmul.f32 %v207_v4, %v198_v0  ;;  %s294_s27 = sshll.u32 (%p54_p8), %s679_s4, 4  ;;  %s295_s27 = int_to_ptr.hbm [resolvable:$true] %s294_s27 }
  0x38   : > { %209 = vadd.xlane.f32.xlu0 %v208_v5 }
  0x3b   :  { %v218_v14 = vld [vmem:[#allocation10] sm:$0xff] (%p54_p8)  ;;  %v219_v16 = vld [vmem:[#allocation10 + $0x8] sm:$0xff] (%p54_p8) }
  0x3c   :  { %v223_v15 = vsel (%p54_p8), %vm220_vm2, %v218_v14, -1e+30  ;;  %v224_v17 = vsel (%p54_p8), %vm220_vm2, %v219_v16, -1e+30 }
  0x40   :  { %225 = vmax.xlane.f32.xlu0 (%p54_p8), %v223_v15 }
  0x48   :  { %227 = vmax.xlane.f32.xlu0 (%p54_p8), %v224_v17 }
  0xab   : > { %v210_v6 = vpop.xlane.xlu0 %209 }
  0xac   : > { %v211_v7 = vrot.slane %v210_v6, 4 }
  0xae   : > { %v212_v8 = vadd.f32 %v211_v7, %v210_v6 }
  0xb0   : > { %v213_v9 = vrot.slane %v212_v8, 2 }
  0xb2   : > { %v214_v10 = vadd.f32 %v213_v9, %v212_v8 }
  0xb3   :  { %v226_v18 = vpop.xlane.xlu0 (%p54_p8), %225 }
  0xb4   : > { %v215_v11 = vrot.slane %v214_v10, 1  ;;  %v229_v19 = vsub.f32 (%p54_p8), %v223_v15, %v226_v18 }
  0xb6   : > { %v216_v12 = vadd.f32 %v215_v11, %v214_v10  ;;  %56 = sbr.rel (!%p54_p8) target bundleno = 17 (0x11), region = 61  ;;  %v231_v20 = vmul.f32 (%p54_p8), 1.442695, %v229_v19 }
  0xb8   : > { %v217_v13 = vadd.f32 %v466_v3, %v216_v12   ;;  %356 = vpow2.f32 (%p54_p8), %v231_v20 }
  0xba   : > { %v699_v3 = vmov %v217_v13 }
  0xbb   :  { %v228_v3 = vpop.xlane.xlu0 %227 }
  0xbc   :  { %v230_v21 = vsub.f32 %v224_v17, %v228_v3 }
  0xbe   :  { %v357_v22 = vpop.eup %356  ;;  %v233_v23 = vmul.f32 1.442695, %v230_v21 }
  0xbf   :  { %235 = vadd.xlane.f32.xlu1 %v357_v22 }
  0xc0   :  { %358 = vpow2.f32 %v233_v23 }
  0xc6   :  { %v359_v24 = vpop.eup %358 }
  0xc7   :  { %237 = vadd.xlane.f32.xlu1 %v359_v24 }
 0x132   :  { %v236_v2 = vpop.xlane.xlu1 %235 }
 0x133   :  { %360 = vlog2.f32 %v236_v2 }
 0x139   :  { %v361_v26 = vpop.eup %360 }
 0x13a   :  { %v238_v25 = vpop.xlane.xlu1 %237  ;;  %v240_v27 = vmul.f32 0.6931472, %v361_v26 }
 0x13b   :  { %362 = vlog2.f32 %v238_v25 }
 0x13c   :  { %v243_v30 = vadd.f32 %v240_v27, %v226_v18 }
 0x141   :  { %v363_v28 = vpop.eup %362 }
 0x142   :  { %v242_v29 = vmul.f32 0.6931472, %v363_v28 }
 0x144   :  { %v244_v31 = vadd.f32 %v242_v29, %v228_v3 }
 0x146   :  { %v255_v32 = vadd.f32 %v244_v31, %v243_v30 }
 0x148   :  { %v256_v33 = vrot.slane %v255_v32, 4 }
 0x14a   :  { %v257_v34 = vadd.f32 %v256_v33, %v255_v32 }
 0x14c   :  { %v258_v35 = vrot.slane %v257_v34, 2 }
 0x14e   :  { %v259_v36 = vadd.f32 %v258_v35, %v257_v34 }
 0x150   :  { %v260_v37 = vrot.slane %v259_v36, 1 }
 0x152   :  { %v261_v38 = vadd.f32 %v260_v37, %v259_v36 }
 0x154   :  { %v262_v39 = vsub.f32 %v261_v38, %v217_v13 }
 0x156   :  { %v263_v41 = vmul.f32 0.0625, %v262_v39 }
 0x158   :  { %v265_v42 = vadd.f32 %v264_v40, %v263_v41 }
 0x15a   :  { %267 = vst.msk [vmem:[#allocation2] sm:$0x1] %vm48_vm0, %v265_v42 }
 0x161   :  { %v271_v43 = vld [vmem:[#allocation2] sm:$0x1] }
 0x162   :  { %329 = vpush %v271_v43 }
 0x193   :  { %s330_s21 = spop %329 }
 0x194   :  { %275 = sst [smem:[#allocation11]] %s330_s21 }
 0x195   :  { %297 = dma.smem_to_hbm %s480_s22, 16, %s295_s27, [#allocation9]  }
 0x196   :  { %460 = dma.done.wait [#allocation8], 256  }
 0x197   :  { %461 = vsyncadd [#allocation8], 4294967040 }
 0x198   :  { %462 = dma.done.wait [#allocation9], 16  }
 0x199   :  { %463 = vsyncadd [#allocation9], 4294967280 }
 0x19a   :  { %306 = sfence }
 0x19b   :  { %307 = vsyncpa [#allocation7], 1 }
 0x19c   :  { %308 = vsyncpa [#allocation8], 1 }
 0x19d   :  { %309 = vsyncpa [#allocation9], 1 }

</bundles_post_ra>
